<compile_context>
chip_gen: v5e
topology: v5e:2x2
jax: 0.10.0
libtpu: 0.0.40
codegen_flags: <defaults>
</compile_context>

<pallas_src>
import jax
import jax.numpy as jnp
from jax import lax
from jax.experimental import pallas as pl
from jax.experimental.pallas import tpu as pltpu

MARGIN = 0.0           # fixed by ContrastiveLoss.__init__ (uses Contrastive defaults)
MAX_VIOLATION = False  # fixed by ContrastiveLoss.__init__ (uses Contrastive defaults)


def _round_up(x, m):
    return ((x + m - 1) // m) * m


def _make_kernel(emit_scores, tb, b_actual, b_pad):
    """Build the tiled contrastive-loss kernel body (static config baked in)."""
    needs_pad_mask = b_pad != b_actual

    def kernel(im_ref, s_ref, diag_row_ref, diag_col_ref, *rest):
        if emit_scores:
            partial_ref, scores_ref, acc_ref = rest
        else:
            partial_ref, acc_ref = rest
            scores_ref = None

        i = pl.program_id(0)    # row block of scores (im rows)
        j = pl.program_id(1)    # col block of scores (s rows)
        k = pl.program_id(2)    # feature-dim reduction block
        nk = pl.num_programs(2)

        # New i block: zero the per-i partial-loss accumulator.  Its output
        # BlockSpec index is constant over j/k, so it stays resident in VMEM
        # for the whole j/k sweep and is written back to HBM once per i.
        @pl.when((j == 0) & (k == 0))
        def _():
            partial_ref[...] = jnp.zeros_like(partial_ref)

        # New (i, j) scores tile: zero the MXU accumulator.
        @pl.when(k == 0)
        def _():
            acc_ref[...] = jnp.zeros_like(acc_ref)

        # MXU: contract the feature dim of both tiles directly.
        acc_ref[...] += lax.dot_general(
            im_ref[...], s_ref[...],
            dimension_numbers=(((1,), (1,)), ((), ())),
            preferred_element_type=jnp.float32,
        )

        # Epilogue, once per (i, j) scores tile.
        @pl.when(k == nk - 1)
        def _():
            scores = acc_ref[...]                            # (tb, tb) f32
            if emit_scores:
                scores_ref[...] = scores.astype(scores_ref.dtype)

            d_row = diag_row_ref[...]                        # (tb, 1): scores[r, r]
            d_col = diag_col_ref[...]                        # (1, tb): scores[c, c]
            # Hinge costs fused into one tile and one reduction.
            cost = (jnp.maximum(MARGIN + scores - d_row, 0.0) +
                    jnp.maximum(MARGIN + scores - d_col, 0.0))

            # Exclude the diagonal (matches masked_fill_ in the reference; kept
            # because the diagonal is prefetched from sum(im*s) rather than
            # re-read from the MXU scores, so it is not bitwise identical) and
            # any zero-padding rows/cols.  Cheap: runs once per (i, j) tile.
            row_g = i * tb + lax.broadcasted_iota(jnp.int32, (tb, 1), 0)
            col_g = j * tb + lax.broadcasted_iota(jnp.int32, (1, tb), 1)
            keep = row_g != col_g
            if needs_pad_mask:
                keep = keep & (row_g < b_actual) & (col_g < b_actual)
            cost = jnp.where(keep, cost, 0.0)

            # Accumulate this tile's contribution into the per-i partial loss.
            partial_ref[...] = partial_ref[...] + jnp.sum(cost)

    return kernel


def contrastive_loss(im, s, return_similarity_mat=False, *, block_b=256, block_d=512):
    """Pallas TPU ContrastiveLoss.forward.

    block_b / block_d are the batch / feature tile sizes.  The 256/512 defaults
    target v6e / v7x MXU geometry; on v5e use block_b=128 (optionally with bf16
    inputs).  Tiles are clamped for small problems.
    """
    im = jnp.asarray(im, jnp.float32)
    s = jnp.asarray(s, jnp.float32)
    B, D = im.shape
    assert s.shape == (B, D), "im and s must both be (batch, dim)"

    tb = min(block_b, _round_up(B, 128))     # batch tile (lane/sublane aligned)
    tk = min(block_d, _round_up(D, 128))     # feature tile
    b_pad = _round_up(B, tb)
    d_pad = _round_up(D, tk)
    nbi = b_pad // tb
    nbk = d_pad // tk

    # diag[i] = <im_i, s_i>: cheap O(B*D) VALU work, done once in the wrapper
    # instead of masked extraction from the (B, B) scores matrix in-kernel.
    diag = jnp.sum(im * s, axis=-1)

    im_p = jnp.pad(im, ((0, b_pad - B), (0, d_pad - D)))
    s_p = jnp.pad(s, ((0, b_pad - B), (0, d_pad - D)))
    diag_p = jnp.pad(diag, (0, b_pad - B))
    diag_row = diag_p.reshape(b_pad, 1)      # (tb, 1) tiles, indexed by i
    diag_col = diag_p.reshape(1, b_pad)      # (1, tb) tiles, indexed by j

    emit_scores = bool(return_similarity_mat)
    kernel = _make_kernel(emit_scores, tb, B, b_pad)

    # Per-i partial losses: one (8, 128)-padded row per i block (keeps the
    # output BlockSpec (8,128)-compliant and lets the i axis be core-parallel).
    partial_shape = jax.ShapeDtypeStruct((nbi, 8, 128), jnp.float32)
    partial_spec = pl.BlockSpec((1, 8, 128), lambda i, j, k: (i, 0, 0))
    if emit_scores:
        out_shape = (partial_shape, jax.ShapeDtypeStruct((b_pad, b_pad), jnp.float32))
        out_specs = (partial_spec, pl.BlockSpec((tb, tb), lambda i, j, k: (i, j)))
    else:
        out_shape = partial_shape
        out_specs = partial_spec

    flops = 2 * b_pad * b_pad * d_pad + 8 * b_pad * b_pad
    bytes_accessed = 4 * (2 * nbi * b_pad * d_pad           # im re-read per j block, s per i block
                          + 2 * b_pad                        # diagonal vectors
                          + nbi * 8 * 128                    # per-i partial losses
                          + (b_pad * b_pad if emit_scores else 0))

    grid_spec = pltpu.PrefetchScalarGridSpec(
        num_scalar_prefetch=0,
        grid=(nbi, nbi, nbk),
        in_specs=[
            pl.BlockSpec((tb, tk), lambda i, j, k: (i, k)),   # im tile
            pl.BlockSpec((tb, tk), lambda i, j, k: (j, k)),   # s tile
            pl.BlockSpec((tb, 1), lambda i, j, k: (i, 0)),    # diag for this row block
            pl.BlockSpec((1, tb), lambda i, j, k: (0, j)),    # diag for this col block
        ],
        out_specs=out_specs,
        scratch_shapes=[pltpu.VMEM((tb, tb), jnp.float32)],   # MXU accumulator
    )

    outs = pl.pallas_call(
        kernel,
        out_shape=out_shape,
        grid_spec=grid_spec,
        compiler_params=pltpu.CompilerParams(
            # Loss partials / scores tiles are disjoint per i => i may be
            # sharded across TensorCores (v7x).  j and k revisit the same
            # partial-loss block => "arbitrary".
            dimension_semantics=("parallel", "arbitrary", "arbitrary"),
            vmem_limit_bytes=64 * 1024 * 1024,
        ),
        cost_estimate=pl.CostEstimate(
            flops=flops, transcendentals=0, bytes_accessed=bytes_accessed),
    )(im_p, s_p, diag_row, diag_col)

    if emit_scores:
        partials, scores_p = outs
        loss = jnp.sum(partials[:, 0, 0])
        return loss, scores_p[:B, :B]
    partials = outs
    return jnp.sum(partials[:, 0, 0])


def _reference_loss(im, s):
    """Pure-JAX reference mirroring the PyTorch forward."""
    scores = im @ s.T
    diag = jnp.diag(scores)
    d1 = diag[:, None]                      # expand along columns
    d2 = diag[None, :]                      # expand along rows
    cost_s = jnp.maximum(MARGIN + scores - d1, 0.0)
    cost_im = jnp.maximum(MARGIN + scores - d2, 0.0)
    eye = jnp.eye(scores.shape[0], dtype=bool)
    cost_s = jnp.where(eye, 0.0, cost_s)
    cost_im = jnp.where(eye, 0.0, cost_im)
    return cost_s.sum() + cost_im.sum(), scores


if __name__ == "__main__":
    key = jax.random.PRNGKey(0)
    k_im, k_s = jax.random.split(key)

    B, D = 8, 32   # small synthetic shapes: batch of 8 paired embeddings, dim 32
    im = jax.random.normal(k_im, (B, D), dtype=jnp.float32)
    s = jax.random.normal(k_s, (B, D), dtype=jnp.float32)

    # Path 1: loss + similarity matrix.
    loss, scores = contrastive_loss(im, s, return_similarity_mat=True)
    loss = jax.block_until_ready(loss)
    scores = jax.block_until_ready(scores)

    # Path 2: loss only (skips the (B,B) scores HBM writeback entirely).
    loss_only = jax.block_until_ready(contrastive_loss(im, s))

    ref_loss, ref_scores = _reference_loss(im, s)
    assert scores.shape == (B, B), "scores shape mismatch"
    assert jnp.allclose(scores, ref_scores, atol=1e-4, rtol=1e-5), "scores mismatch"
    assert jnp.allclose(loss, ref_loss, atol=1e-3, rtol=1e-5), "loss mismatch"
    assert jnp.allclose(loss_only, ref_loss, atol=1e-3, rtol=1e-5), "loss-only mismatch"

    print("KERNEL_OK")
</pallas_src>

<mosaic_0001>
module attributes {stable_mosaic.version = 11 : i64} {
  func.func @kernel(%arg0: i32, %arg1: i32, %arg2: i32, %arg3: memref<128x128xf32, #tpu.memory_space<vmem>>, %arg4: memref<128x128xf32, #tpu.memory_space<vmem>>, %arg5: memref<128x1xf32, #tpu.memory_space<vmem>>, %arg6: memref<1x128xf32, #tpu.memory_space<vmem>>, %arg7: memref<1x8x128xf32, #tpu.memory_space<vmem>>, %arg8: memref<128x128xf32, #tpu.memory_space<vmem>>, %arg9: memref<128x128xf32, #tpu.memory_space<vmem>>) attributes {dimension_semantics = [#tpu.dimension_semantics<parallel>, #tpu.dimension_semantics<arbitrary>, #tpu.dimension_semantics<arbitrary>], iteration_bounds = array<i64: 1, 1, 1>, scalar_prefetch = 0 : i64, scratch_operands = 1 : i64, tpu.core_type = #tpu.core_type<tc>, window_params = [{transform_indices = @transform_0, window_bounds = array<i64: 128, 128>}, {transform_indices = @transform_1, window_bounds = array<i64: 128, 128>}, {transform_indices = @transform_2, window_bounds = array<i64: 128, 1>}, {transform_indices = @transform_3, window_bounds = array<i64: 1, 128>}, {transform_indices = @transform_4, window_bounds = array<i64: 1, 8, 128>}, {transform_indices = @transform_5, window_bounds = array<i64: 128, 128>}]} {
    %c0_i32 = arith.constant 0 : i32
    %0 = arith.cmpi eq, %arg1, %c0_i32 : i32
    %c0_i32_0 = arith.constant 0 : i32
    %1 = arith.cmpi eq, %arg2, %c0_i32_0 : i32
    %2 = arith.andi %0, %1 : i1
    %3 = arith.extui %2 : i1 to i32
    %c0_i32_1 = arith.constant 0 : i32
    %4 = arith.cmpi ne, %3, %c0_i32_1 : i32
    scf.if %4 {
      %cst_13 = arith.constant 0.000000e+00 : f32
      %17 = vector.broadcast %cst_13 : f32 to vector<1x8x128xf32>
      %c0_14 = arith.constant 0 : index
      %c0_15 = arith.constant 0 : index
      %c0_16 = arith.constant 0 : index
      %18 = vector.load %arg7[%c0_14, %c0_15, %c0_16] : memref<1x8x128xf32, #tpu.memory_space<vmem>>, vector<1x8x128xf32>
      tpu.vector_store %arg7[%c0_14, %c0_15, %c0_16], %17 {strides = array<i32>} : memref<1x8x128xf32, #tpu.memory_space<vmem>>, vector<1x8x128xf32>,
    } else {
    }
    %c0_i32_2 = arith.constant 0 : i32
    %5 = arith.cmpi eq, %arg2, %c0_i32_2 : i32
    %6 = arith.extui %5 : i1 to i32
    %c0_i32_3 = arith.constant 0 : i32
    %7 = arith.cmpi ne, %6, %c0_i32_3 : i32
    scf.if %7 {
      %cst_13 = arith.constant 0.000000e+00 : f32
      %17 = vector.broadcast %cst_13 : f32 to vector<128x128xf32>
      %c0_14 = arith.constant 0 : index
      %c0_15 = arith.constant 0 : index
      %18 = vector.load %arg9[%c0_14, %c0_15] : memref<128x128xf32, #tpu.memory_space<vmem>>, vector<128x128xf32>
      tpu.vector_store %arg9[%c0_14, %c0_15], %17 {strides = array<i32>} : memref<128x128xf32, #tpu.memory_space<vmem>>, vector<128x128xf32>,
    } else {
    }
    %c0 = arith.constant 0 : index
    %c0_4 = arith.constant 0 : index
    %8 = vector.load %arg9[%c0, %c0_4] : memref<128x128xf32, #tpu.memory_space<vmem>>, vector<128x128xf32>
    %c0_5 = arith.constant 0 : index
    %c0_6 = arith.constant 0 : index
    %9 = vector.load %arg3[%c0_5, %c0_6] : memref<128x128xf32, #tpu.memory_space<vmem>>, vector<128x128xf32>
    %c0_7 = arith.constant 0 : index
    %c0_8 = arith.constant 0 : index
    %10 = vector.load %arg4[%c0_7, %c0_8] : memref<128x128xf32, #tpu.memory_space<vmem>>, vector<128x128xf32>
    %cst = arith.constant dense<0.000000e+00> : vector<128x128xf32>
    %11 = tpu.matmul %9, %10, %cst {dimension_numbers = #tpu.dot_dimension_numbers<[1], [1], [0], [0], [0, 0, 1, 0], [], []>} : vector<128x128xf32>, vector<128x128xf32>, vector<128x128xf32> -> vector<128x128xf32>
    %12 = arith.addf %8, %11 : vector<128x128xf32>
    %c0_9 = arith.constant 0 : index
    %c0_10 = arith.constant 0 : index
    %13 = vector.load %arg9[%c0_9, %c0_10] : memref<128x128xf32, #tpu.memory_space<vmem>>, vector<128x128xf32>
    tpu.vector_store %arg9[%c0_9, %c0_10], %12 {strides = array<i32>} : memref<128x128xf32, #tpu.memory_space<vmem>>, vector<128x128xf32>,
    %c0_i32_11 = arith.constant 0 : i32
    %14 = arith.cmpi eq, %arg2, %c0_i32_11 : i32
    %15 = arith.extui %14 : i1 to i32
    %c0_i32_12 = arith.constant 0 : i32
    %16 = arith.cmpi ne, %15, %c0_i32_12 : i32
    scf.if %16 {
      %c0_13 = arith.constant 0 : index
      %c0_14 = arith.constant 0 : index
      %17 = vector.load %arg9[%c0_13, %c0_14] : memref<128x128xf32, #tpu.memory_space<vmem>>, vector<128x128xf32>
      %c0_15 = arith.constant 0 : index
      %c0_16 = arith.constant 0 : index
      %18 = vector.load %arg8[%c0_15, %c0_16] : memref<128x128xf32, #tpu.memory_space<vmem>>, vector<128x128xf32>
      tpu.vector_store %arg8[%c0_15, %c0_16], %17 {strides = array<i32>} : memref<128x128xf32, #tpu.memory_space<vmem>>, vector<128x128xf32>,
      %c0_17 = arith.constant 0 : index
      %c0_18 = arith.constant 0 : index
      %19 = vector.load %arg5[%c0_17, %c0_18] : memref<128x1xf32, #tpu.memory_space<vmem>>, vector<128x1xf32>
      %c0_19 = arith.constant 0 : index
      %c0_20 = arith.constant 0 : index
      %20 = vector.load %arg6[%c0_19, %c0_20] : memref<1x128xf32, #tpu.memory_space<vmem>>, vector<1x128xf32>
      %cst_21 = arith.constant 0.000000e+00 : f32
      %21 = vector.broadcast %cst_21 : f32 to vector<128x128xf32>
      %22 = arith.addf %21, %17 : vector<128x128xf32>
      %23 = vector.broadcast %19 : vector<128x1xf32> to vector<128x128xf32>
      %24 = arith.subf %22, %23 : vector<128x128xf32>
      %cst_22 = arith.constant 0.000000e+00 : f32
      %25 = vector.broadcast %cst_22 : f32 to vector<128x128xf32>
      %26 = arith.maximumf %24, %25 : vector<128x128xf32>
      %cst_23 = arith.constant 0.000000e+00 : f32
      %27 = vector.broadcast %cst_23 : f32 to vector<128x128xf32>
      %28 = arith.addf %27, %17 : vector<128x128xf32>
      %29 = vector.broadcast %20 : vector<1x128xf32> to vector<128x128xf32>
      %30 = arith.subf %28, %29 : vector<128x128xf32>
      %cst_24 = arith.constant 0.000000e+00 : f32
      %31 = vector.broadcast %cst_24 : f32 to vector<128x128xf32>
      %32 = arith.maximumf %30, %31 : vector<128x128xf32>
      %33 = arith.addf %26, %32 : vector<128x128xf32>
      %c128_i32 = arith.constant 128 : i32
      %34 = arith.muli %arg0, %c128_i32 : i32
      %35 = tpu.iota {dimensions = array<i32: 0>} : vector<128x1xi32>
      %36 = vector.broadcast %34 : i32 to vector<128x1xi32>
      %37 = arith.addi %36, %35 : vector<128x1xi32>
      %c128_i32_25 = arith.constant 128 : i32
      %38 = arith.muli %arg1, %c128_i32_25 : i32
      %39 = tpu.iota {dimensions = array<i32: 1>} : vector<1x128xi32>
      %40 = vector.broadcast %38 : i32 to vector<1x128xi32>
      %41 = arith.addi %40, %39 : vector<1x128xi32>
      %42 = vector.broadcast %37 : vector<128x1xi32> to vector<128x128xi32>
      %43 = vector.broadcast %41 : vector<1x128xi32> to vector<128x128xi32>
      %44 = arith.cmpi ne, %42, %43 : vector<128x128xi32>
      %c8_i32 = arith.constant 8 : i32
      %45 = vector.broadcast %c8_i32 : i32 to vector<128x1xi32>
      %46 = arith.cmpi slt, %37, %45 : vector<128x1xi32>
      %47 = vector.broadcast %46 : vector<128x1xi1> to vector<128x128xi1>
      %48 = arith.andi %44, %47 : vector<128x128xi1>
      %c8_i32_26 = arith.constant 8 : i32
      %49 = vector.broadcast %c8_i32_26 : i32 to vector<1x128xi32>
      %50 = arith.cmpi slt, %41, %49 : vector<1x128xi32>
      %51 = vector.broadcast %50 : vector<1x128xi1> to vector<128x128xi1>
      %52 = arith.andi %48, %51 : vector<128x128xi1>
      %cst_27 = arith.constant 0.000000e+00 : f32
      %53 = vector.broadcast %cst_27 : f32 to vector<128x128xf32>
      %54 = arith.select %52, %33, %53 : vector<128x128xi1>, vector<128x128xf32>
      %c0_28 = arith.constant 0 : index
      %c0_29 = arith.constant 0 : index
      %c0_30 = arith.constant 0 : index
      %55 = vector.load %arg7[%c0_28, %c0_29, %c0_30] : memref<1x8x128xf32, #tpu.memory_space<vmem>>, vector<1x8x128xf32>
      %56 = vector.shape_cast %54 : vector<128x128xf32> to vector<1x128x128xf32>
      %cst_31 = arith.constant dense<0.000000e+00> : vector<1xf32>
      %57 = vector.multi_reduction <add>, %56, %cst_31 [1, 2] : vector<1x128x128xf32> to vector<1xf32>
      %58 = vector.shape_cast %57 : vector<1xf32> to vector<1x1x1xf32>
      %59 = vector.extract %58[0, 0, 0] : f32 from vector<1x1x1xf32>
      %60 = vector.broadcast %59 : f32 to vector<1x8x128xf32>
      %61 = arith.addf %55, %60 : vector<1x8x128xf32>
      %c0_32 = arith.constant 0 : index
      %c0_33 = arith.constant 0 : index
      %c0_34 = arith.constant 0 : index
      %62 = vector.load %arg7[%c0_32, %c0_33, %c0_34] : memref<1x8x128xf32, #tpu.memory_space<vmem>>, vector<1x8x128xf32>
      tpu.vector_store %arg7[%c0_32, %c0_33, %c0_34], %61 {strides = array<i32>} : memref<1x8x128xf32, #tpu.memory_space<vmem>>, vector<1x8x128xf32>,
    } else {
    }
    return
  }
  func.func @transform_0(%arg0: i32, %arg1: i32, %arg2: i32) -> (i32, i32) {
    %c0_i32 = arith.constant 0 : i32
    return %arg0, %arg2 : i32, i32
  }
  func.func @transform_1(%arg0: i32, %arg1: i32, %arg2: i32) -> (i32, i32) {
    %c0_i32 = arith.constant 0 : i32
    return %arg1, %arg2 : i32, i32
  }
  func.func @transform_2(%arg0: i32, %arg1: i32, %arg2: i32) -> (i32, i32) {
    %c0_i32 = arith.constant 0 : i32
    %c0_i32_0 = arith.constant 0 : i32
    return %arg0, %c0_i32 : i32, i32
  }
  func.func @transform_3(%arg0: i32, %arg1: i32, %arg2: i32) -> (i32, i32) {
    %c0_i32 = arith.constant 0 : i32
    %c0_i32_0 = arith.constant 0 : i32
    return %c0_i32, %arg1 : i32, i32
  }
  func.func @transform_4(%arg0: i32, %arg1: i32, %arg2: i32) -> (i32, i32, i32) {
    %c0_i32 = arith.constant 0 : i32
    %c0_i32_0 = arith.constant 0 : i32
    %c0_i32_1 = arith.constant 0 : i32
    return %arg0, %c0_i32, %c0_i32_0 : i32, i32, i32
  }
  func.func @transform_5(%arg0: i32, %arg1: i32, %arg2: i32) -> (i32, i32) {
    %c0_i32 = arith.constant 0 : i32
    return %arg0, %arg1 : i32, i32
  }
}

</mosaic_0001>

<bundles_post_ra>
// kernel: tpu_custom_call.1
= control target key start
LH: loop header
LB: loop body
LE: loop exit
PB: predicated region body
PF: predicated region fallthrough
CT: control target
= control target key end

     0   :  { %11 = vsyncpa [#allocation4], 0  ;;  %s899_s0 = inlined_call_operand.vmem [shape: f32[128,128], index: 0, kind: input, shape index: {}]   ;;  %s900_s1 = inlined_call_operand.hbm [shape: f32[128,128], index: 1, kind: input, shape index: {}]   ;;  %s901_s2 = inlined_call_operand.vmem [shape: f32[128,1], index: 2, kind: input, shape index: {}]   ;;  %s902_s3 = inlined_call_operand.vmem [shape: f32[1,128], index: 3, kind: input, shape index: {}]   ;;  %s903_s4 = inlined_call_operand.hbm [shape: f32[1,8,128], index: 4, kind: output, shape index: {0}]   ;;  %s904_s5 = inlined_call_operand.hbm [shape: f32[128,128], index: 5, kind: output, shape index: {1}]  }
   0x1   :  { %12 = vsyncpa [#allocation5], 0 }
   0x2   :  { %13 = vsyncpa [#allocation8], 0  ;;  %s20_s20 = sshll.u32 %s900_s1, 4  ;;  %s794_s21 = smov [#allocation3]   ;;  %s21_s20 = int_to_ptr.hbm [resolvable:$true] %s20_s20 }
   0x3   :  { %s22_s22 = sshll.u32 %s794_s21, 4  ;;  %s795_s23 = smov 128   ;;  %s23_s22 = int_to_ptr.vmem [resolvable:$true] %s22_s22 }
   0x4   :  { %s796_s24 = smov 8  }
   0x5   :  { %28 = dma.hbm_to_vmem [thread:$0]  %s21_s20, 2048, %s23_s22, [#allocation4], %s795_s23, %s795_s23, %s796_s24  }
   0x6   :  { %788 = dma.done.wait [#allocation4], 2048  }
   0x7   :  { %789 = vsyncadd [#allocation4], 4294965248  ;;  %v110_v0 = vld [vmem:[#allocation3 + $0x78] sm:$0xff]  ;;  %v109_v1 = vld [vmem:[#allocation3 + $0x70] sm:$0xff]  ;;  %v797_v10 = vmov 0   ;;  %v440_v31 = vlaneseq  ;;  %s639_s11 = sshll.u32 %s904_s5, 4  ;;  %s640_s11 = int_to_ptr.hbm [resolvable:$true] %s639_s11 }
   0x8   :  { %111 = vmatpush.xpose.msra.mxu0 %v110_v0  ;;  %658 = vmatpush.xpose.msra.mxu2 %v110_v0  ;;  %v108_v2 = vld [vmem:[#allocation3 + $0x68] sm:$0xff]  ;;  %v107_v3 = vld [vmem:[#allocation3 + $0x60] sm:$0xff]  ;;  %v106_v4 = vld [vmem:[#allocation3 + $0x58] sm:$0xff]  ;;  %s799_s12 = smov [#allocation6]   ;;  %s629_s5 = sshll.u32 %s903_s4, 4  ;;  %s630_s5 = int_to_ptr.hbm [resolvable:$true] %s629_s5 }
   0x9   :  { %659 = vmatpush.xpose.msra.mxu3 %v110_v0  ;;  %657 = vmatpush.xpose.msra.mxu1 %v110_v0  ;;  %v105_v5 = vld [vmem:[#allocation3 + $0x50] sm:$0xff]  ;;  %v104_v6 = vld [vmem:[#allocation3 + $0x48] sm:$0xff]  ;;  %v103_v7 = vld [vmem:[#allocation3 + $0x40] sm:$0xff]  ;;  %v441_v32 = vshrl.u32 %v440_v31, 7  ;;  %v476_v33 = vand.u32 127, %v440_v31  ;;  %s627_s13 = sshll.u32 %s799_s12, 4  ;;  %s628_s13 = int_to_ptr.vmem [resolvable:$true] %s627_s13 }
   0xa   :  { %v102_v8 = vld [vmem:[#allocation3 + $0x38] sm:$0xff]  ;;  %v243_v9 = vld [vmem:[%s901_s2] sm:$0xff]  ;;  %714 = vset.pattern.permute.xlu0 %v797_v10  ;;  %v101_v11 = vld [vmem:[#allocation3 + $0x30] sm:$0xff] }
   0xb   :  { %278 = vperm.xlu0 %714, %v243_v9   ;;  %v100_v12 = vld [vmem:[#allocation3 + $0x28] sm:$0xff]  ;;  %v99_v13 = vld [vmem:[#allocation3 + $0x20] sm:$0xff]  ;;  %v98_v14 = vld [vmem:[#allocation3 + $0x18] sm:$0xff]  ;;  %vm479_vm0 = vcmp.ne.s32.totalorder %v441_v32, %v476_v33  ;;  %vm559_vm1 = vcmp.lt.s32.totalorder %v476_v33, 8 }
   0xc   :  { %112 = vmatpush.xpose.msra.mxu0 %v109_v1  ;;  %661 = vmatpush.xpose.msra.mxu2 %v109_v1  ;;  %v97_v15 = vld [vmem:[#allocation3 + $0x10] sm:$0xff]  ;;  %v96_v16 = vld [vmem:[#allocation3 + $0x8] sm:$0xff]  ;;  %v95_v17 = vld [vmem:[#allocation3] sm:$0xff] }
   0xd   :  { %662 = vmatpush.xpose.msra.mxu3 %v109_v1  ;;  %660 = vmatpush.xpose.msra.mxu1 %v109_v1  ;;  %v79_v18 = vld [vmem:[%s899_s0] sm:$0xff]  ;;  %v80_v22 = vld [vmem:[%s899_s0 + $0x8] sm:$0xff]  ;;  %v81_v26 = vld [vmem:[%s899_s0 + $0x10] sm:$0xff] }
   0xe   :  { %v87_v19 = vld [vmem:[%s899_s0 + $0x40] sm:$0xff]  ;;  %v88_v23 = vld [vmem:[%s899_s0 + $0x48] sm:$0xff]  ;;  %v89_v27 = vld [vmem:[%s899_s0 + $0x50] sm:$0xff] }
   0xf   :  { %v91_v20 = vld [vmem:[%s899_s0 + $0x60] sm:$0xff]  ;;  %v92_v24 = vld [vmem:[%s899_s0 + $0x68] sm:$0xff]  ;;  %v93_v28 = vld [vmem:[%s899_s0 + $0x70] sm:$0xff] }
  0x10   :  { %113 = vmatpush.xpose.msra.mxu0 %v108_v2  ;;  %664 = vmatpush.xpose.msra.mxu2 %v108_v2  ;;  %v83_v21 = vld [vmem:[%s899_s0 + $0x20] sm:$0xff]  ;;  %v84_v25 = vld [vmem:[%s899_s0 + $0x28] sm:$0xff]  ;;  %v85_v29 = vld [vmem:[%s899_s0 + $0x30] sm:$0xff] }
  0x11   :  { %665 = vmatpush.xpose.msra.mxu3 %v108_v2  ;;  %663 = vmatpush.xpose.msra.mxu1 %v108_v2  ;;  %v82_v30 = vld [vmem:[%s899_s0 + $0x18] sm:$0xff]  ;;  %v715_v34 = vld [vmem:[%s902_s3] ss:$0 sm:$0xff]  ;;  %vm562_vm2 = vmand %vm479_vm0, %vm559_vm1 }
  0x12   :  { %v90_v36 = vld [vmem:[%s899_s0 + $0x58] sm:$0xff] }
  0x13   :  { %v94_v37 = vld [vmem:[%s899_s0 + $0x78] sm:$0xff] }
  0x14   :  { %114 = vmatpush.xpose.msra.mxu0 %v107_v3  ;;  %667 = vmatpush.xpose.msra.mxu2 %v107_v3  ;;  %v86_v38 = vld [vmem:[%s899_s0 + $0x38] sm:$0xff]  ;;  %s798_s0 = smov [#allocation7]  }
  0x15   :  { %668 = vmatpush.xpose.msra.mxu3 %v107_v3  ;;  %666 = vmatpush.xpose.msra.mxu1 %v107_v3  ;;  %s637_s3 = sshll.u32 %s798_s0, 4  ;;  %s638_s3 = int_to_ptr.vmem [resolvable:$true] %s637_s3 }
  0x18   :  { %115 = vmatpush.xpose.msra.mxu0 %v106_v4  ;;  %670 = vmatpush.xpose.msra.mxu2 %v106_v4 }
  0x19   :  { %671 = vmatpush.xpose.msra.mxu3 %v106_v4  ;;  %669 = vmatpush.xpose.msra.mxu1 %v106_v4 }
  0x1c   :  { %116 = vmatpush.xpose.msra.mxu0 %v105_v5  ;;  %673 = vmatpush.xpose.msra.mxu2 %v105_v5 }
  0x1d   :  { %674 = vmatpush.xpose.msra.mxu3 %v105_v5  ;;  %672 = vmatpush.xpose.msra.mxu1 %v105_v5 }
  0x20   :  { %117 = vmatpush.xpose.msra.mxu0 %v104_v6  ;;  %676 = vmatpush.xpose.msra.mxu2 %v104_v6 }
  0x21   :  { %677 = vmatpush.xpose.msra.mxu3 %v104_v6  ;;  %675 = vmatpush.xpose.msra.mxu1 %v104_v6 }
  0x24   :  { %118 = vmatpush.xpose.msra.mxu0 %v103_v7  ;;  %679 = vmatpush.xpose.msra.mxu2 %v103_v7 }
  0x25   :  { %680 = vmatpush.xpose.msra.mxu3 %v103_v7  ;;  %678 = vmatpush.xpose.msra.mxu1 %v103_v7 }
  0x28   :  { %119 = vmatpush.xpose.msra.mxu0 %v102_v8  ;;  %682 = vmatpush.xpose.msra.mxu2 %v102_v8 }
  0x29   :  { %683 = vmatpush.xpose.msra.mxu3 %v102_v8  ;;  %681 = vmatpush.xpose.msra.mxu1 %v102_v8 }
  0x2c   :  { %120 = vmatpush.xpose.msra.mxu0 %v101_v11  ;;  %685 = vmatpush.xpose.msra.mxu2 %v101_v11 }
  0x2d   :  { %686 = vmatpush.xpose.msra.mxu3 %v101_v11  ;;  %684 = vmatpush.xpose.msra.mxu1 %v101_v11 }
  0x30   :  { %121 = vmatpush.xpose.msra.mxu0 %v100_v12  ;;  %688 = vmatpush.xpose.msra.mxu2 %v100_v12 }
  0x31   :  { %689 = vmatpush.xpose.msra.mxu3 %v100_v12  ;;  %687 = vmatpush.xpose.msra.mxu1 %v100_v12 }
  0x34   :  { %122 = vmatpush.xpose.msra.mxu0 %v99_v13  ;;  %691 = vmatpush.xpose.msra.mxu2 %v99_v13 }
  0x35   :  { %692 = vmatpush.xpose.msra.mxu3 %v99_v13  ;;  %690 = vmatpush.xpose.msra.mxu1 %v99_v13 }
  0x38   :  { %123 = vmatpush.xpose.msra.mxu0 %v98_v14  ;;  %694 = vmatpush.xpose.msra.mxu2 %v98_v14 }
  0x39   :  { %695 = vmatpush.xpose.msra.mxu3 %v98_v14  ;;  %693 = vmatpush.xpose.msra.mxu1 %v98_v14 }
  0x3c   :  { %124 = vmatpush.xpose.msra.mxu0 %v97_v15  ;;  %697 = vmatpush.xpose.msra.mxu2 %v97_v15 }
  0x3d   :  { %698 = vmatpush.xpose.msra.mxu3 %v97_v15  ;;  %696 = vmatpush.xpose.msra.mxu1 %v97_v15 }
  0x40   :  { %125 = vmatpush.xpose.msra.mxu0 %v96_v16  ;;  %700 = vmatpush.xpose.msra.mxu2 %v96_v16 }
  0x41   :  { %701 = vmatpush.xpose.msra.mxu3 %v96_v16  ;;  %699 = vmatpush.xpose.msra.mxu1 %v96_v16 }
  0x44   :  { %126 = vmatpush.xpose.msra.mxu0 %v95_v17  ;;  %703 = vmatpush.xpose.msra.mxu2 %v95_v17 }
  0x45   :  { %704 = vmatpush.xpose.msra.mxu3 %v95_v17  ;;  %702 = vmatpush.xpose.msra.mxu1 %v95_v17 }
  0x47   :  { %127 = vmatmul.f32.vlgmr.msra.gmra.mxu0 %v79_v18  ;;  %151 = vmatmul.f32.vlgmr.msra.gmra.mxu2 %v87_v19 }
  0x48   :  { %163 = vmatmul.f32.vlgmr.msra.gmra.mxu3 %v91_v20  ;;  %139 = vmatmul.f32.vlgmr.msra.gmra.mxu1 %v83_v21 }
  0x4f   :  { %130 = vmatmul.f32.gmra.mxu0 %v80_v22  ;;  %154 = vmatmul.f32.gmra.mxu2 %v88_v23 }
  0x50   :  { %166 = vmatmul.f32.gmra.mxu3 %v92_v24  ;;  %142 = vmatmul.f32.gmra.mxu1 %v84_v25 }
  0x57   :  { %133 = vmatmul.f32.gmra.mxu0 %v81_v26  ;;  %157 = vmatmul.f32.gmra.mxu2 %v89_v27 }
  0x58   :  { %169 = vmatmul.f32.gmra.mxu3 %v93_v28  ;;  %145 = vmatmul.f32.gmra.mxu1 %v85_v29 }
  0x5f   :  { %136 = vmatmul.f32.gmra.mxu0 %v82_v30  ;;  %160 = vmatmul.f32.gmra.mxu2 %v90_v36 }
  0x60   :  { %172 = vmatmul.f32.gmra.mxu3 %v94_v37  ;;  %148 = vmatmul.f32.gmra.mxu1 %v86_v38 }
  0x7d   :  { %v279_v35 = vpop.permute.xlu0 %278 }
  0xc4   :  { %v128_v39 = vpop.f32.mrf.mxu0 }
  0xc5   :  { %227 = vst [vmem:[#allocation7] sm:$0xff] %v128_v39  ;;  %v356_v40 = vsub.f32 %v128_v39, %v279_v35  ;;  %v391_v41 = vsub.f32 %v128_v39, %v715_v34  ;;  %v140_v46 = vpop.f32.mrf.mxu1 }
  0xc6   :  { %231 = vst [vmem:[#allocation7 + $0x20] sm:$0xff] %v140_v46 }
  0xc7   :  { %v372_v42 = vmax.f32 %v356_v40, 0.0  ;;  %v407_v43 = vmax.f32 %v391_v41, 0.0 }
  0xc9   :  { %v423_v44 = vadd.f32 %v407_v43, %v372_v42 }
  0xca   :  { %v152_v48 = vpop.f32.mrf.mxu2 }
  0xcb   :  { %v578_v45 = vsel %vm562_vm2, %v423_v44, 0.0  ;;  %v164_v49 = vpop.f32.mrf.mxu3  ;;  %235 = vst [vmem:[#allocation7 + $0x40] sm:$0xff] %v152_v48 }
  0xcc   :  { %610 = vadd.xlane.f32.xlu0 %v578_v45  ;;  %v131_v47 = vpop.f32.mrf.mxu0  ;;  %239 = vst [vmem:[#allocation7 + $0x60] sm:$0xff] %v164_v49 }
  0xcd   :  { %228 = vst [vmem:[#allocation7 + $0x8] sm:$0xff] %v131_v47  ;;  %v143_v50 = vpop.f32.mrf.mxu1 }
  0xce   :  { %232 = vst [vmem:[#allocation7 + $0x28] sm:$0xff] %v143_v50 }
  0xd2   :  { %v155_v52 = vpop.f32.mrf.mxu2 }
  0xd3   :  { %v167_v53 = vpop.f32.mrf.mxu3  ;;  %236 = vst [vmem:[#allocation7 + $0x48] sm:$0xff] %v155_v52 }
  0xd4   :  { %v134_v51 = vpop.f32.mrf.mxu0  ;;  %240 = vst [vmem:[#allocation7 + $0x68] sm:$0xff] %v167_v53 }
  0xd5   :  { %229 = vst [vmem:[#allocation7 + $0x10] sm:$0xff] %v134_v51  ;;  %v146_v54 = vpop.f32.mrf.mxu1 }
  0xd6   :  { %233 = vst [vmem:[#allocation7 + $0x30] sm:$0xff] %v146_v54 }
  0xda   :  { %v158_v57 = vpop.f32.mrf.mxu2 }
  0xdb   :  { %v170_v58 = vpop.f32.mrf.mxu3  ;;  %237 = vst [vmem:[#allocation7 + $0x50] sm:$0xff] %v158_v57 }
  0xdc   :  { %241 = vst [vmem:[#allocation7 + $0x70] sm:$0xff] %v170_v58  ;;  %v137_v0 = vpop.f32.mrf.mxu0 }
  0xdd   :  { %v149_v1 = vpop.f32.mrf.mxu1  ;;  %230 = vst [vmem:[#allocation7 + $0x18] sm:$0xff] %v137_v0 }
  0xde   :  { %234 = vst [vmem:[#allocation7 + $0x38] sm:$0xff] %v149_v1 }
  0xe2   :  { %v161_v2 = vpop.f32.mrf.mxu2 }
  0xe3   :  { %v173_v3 = vpop.f32.mrf.mxu3  ;;  %238 = vst [vmem:[#allocation7 + $0x58] sm:$0xff] %v161_v2 }
  0xe4   :  { %242 = vst [vmem:[#allocation7 + $0x78] sm:$0xff] %v173_v3 }
  0xe5   :  { %645 = dma.vmem_to_hbm [thread:$0]  %s638_s3, 2048, %s640_s11, [#allocation8], %s795_s23, %s795_s23, %s796_s24  }
 0x13f   :  { %v611_v55 = vpop.xlane.xlu0 %610 }
 0x140   :  { %v612_v56 = vrot.slane %v611_v55, 4 }
 0x142   :  { %v613_v59 = vadd.f32 %v612_v56, %v611_v55 }
 0x144   :  { %v614_v60 = vrot.slane %v613_v59, 2 }
 0x146   :  { %v615_v61 = vadd.f32 %v614_v60, %v613_v59 }
 0x148   :  { %v616_v62 = vrot.slane %v615_v61, 1 }
 0x14a   :  { %v617_v63 = vadd.f32 %v616_v62, %v615_v61 }
 0x14c   :  { %705 = vpush %v617_v63 }
 0x17d   :  { %s706_s16 = spop %705 }
 0x17e   :  { %v619_v4 = vstv %s706_s16 }
 0x17f   :  { %621 = vst [vmem:[#allocation6] sm:$0xff] %v619_v4 }
 0x180   :  { %632 = dma.vmem_to_hbm [thread:$0]  %s628_s13, 128, %s630_s5, [#allocation5]  }
 0x181   :  { %790 = dma.done.wait [#allocation5], 128  }
 0x182   :  { %791 = vsyncadd [#allocation5], 4294967168 }
 0x183   :  { %792 = dma.done.wait [#allocation8], 2048  }
 0x184   :  { %793 = vsyncadd [#allocation8], 4294965248 }
 0x185   :  { %654 = vsyncpa [#allocation4], 1 }
 0x186   :  { %655 = vsyncpa [#allocation5], 1 }
 0x187   :  { %656 = vsyncpa [#allocation8], 1 }

</bundles_post_ra>
